<compile_context>
chip_gen: v5e
topology: v5e:2x2
jax: 0.10.0
libtpu: 0.0.40
codegen_flags: <defaults>
</compile_context>

<pallas_src>
import jax
import jax.numpy as jnp
from jax.experimental import pallas as pl
from jax.experimental.pallas import tpu as pltpu


def _action_prompt_kernel(act_ref, wmv_ref, wmo_ref, out_ref):
    f32 = jnp.float32
    # Softmax over a length-1 key axis is identically 1, so the attention
    # context *is* the value projection of the single key token:
    #   out[a] = ((act[a] @ Wv) @ Wo), independent of the comb features.
    act = act_ref[...].astype(wmv_ref.dtype)                         # (A, D) bf16
    v_m = jnp.dot(act, wmv_ref[...], preferred_element_type=f32)     # (A, D) f32 acc
    out = jnp.dot(v_m.astype(wmo_ref.dtype), wmo_ref[...],
                  preferred_element_type=f32)                        # (A, D) f32 acc
    out_ref[...] = out.astype(out_ref.dtype)


def _full_spec(shape):
    # Whole-array block, single kernel invocation (grid=()).
    return pl.BlockSpec(shape, lambda: (0,) * len(shape))


@jax.jit
def action_prompt(comb_fea, action_fea, params):
    """Pallas equivalent of ActionPrompt.forward(comb_fea, action_fea).

    comb_fea:   (1, num_comb, dim) -- provably does not reach the output under
                the length-1-key stand-in, so it is never streamed to the kernel.
    action_fea: (1, num_act,  dim)
    params:     8 (dim, dim) weights (HOIPrompt q/k/v/o, MHA q/k/v/o); only the
                MHA value / output projections influence the output.
    returns:    (num_act, dim)  == total_action_prompt[1:]
    """
    del comb_fea  # interface parity only (see module-level comment)
    _, _, _, _, _, _, wmv, wmo = params
    act = action_fea[0]                                   # (A, D) f32
    A, D = act.shape
    # Stream the two live weights as bf16 (no-op when already stored as bf16).
    wmv = wmv.astype(jnp.bfloat16)
    wmo = wmo.astype(jnp.bfloat16)

    cost = pl.CostEstimate(
        flops=4 * A * D * D,                              # two (A,D)@(D,D) matmuls
        transcendentals=0,
        bytes_accessed=A * D * 4 + 2 * D * D * 2 + A * D * 4,
    )
    return pl.pallas_call(
        _action_prompt_kernel,
        out_shape=jax.ShapeDtypeStruct((A, D), jnp.float32),
        grid=(),
        in_specs=[_full_spec((A, D)), _full_spec((D, D)), _full_spec((D, D))],
        out_specs=_full_spec((A, D)),
        compiler_params=pltpu.CompilerParams(vmem_limit_bytes=32 * 1024 * 1024),
        cost_estimate=cost,
    )(act, wmv, wmo)


def init_params(key, dim, dtype=jnp.bfloat16):
    """8 (dim, dim) projection weights: HOIPrompt q/k/v/o, MHA q/k/v/o.
    Stored in bf16 so the kernel streams half the bytes (perf feedback #3)."""
    keys = jax.random.split(key, 8)
    s = 1.0 / (dim ** 0.5)
    return tuple((jax.random.normal(k, (dim, dim), jnp.float32) * s).astype(dtype)
                 for k in keys)


def action_prompt_reference(comb_fea, action_fea, params):
    """Pure-JAX reference of the FULL stand-in forward (all 8 weights, f32 math).

    Demonstrates that the kernel's algebraic simplification is exact: both
    softmaxes act over a length-1 key axis, so their weights are 1 and the
    output reduces to act @ wmv @ wmo (comb_fea drops out entirely)."""
    whq, whk, whv, who, wmq, wmk, wmv, wmo = [p.astype(jnp.float32) for p in params]
    act = action_fea[0].astype(jnp.float32)     # (A, D)
    comb = comb_fea[0].astype(jnp.float32)      # (C, D)
    D = act.shape[1]
    scale = 1.0 / (D ** 0.5)
    # HOIPrompt stand-in: queries = action tokens, key/value = one comb token.
    q_h = act @ whq
    k_h = comb @ whk
    v_h = comb @ whv
    s_h = (q_h[None, :, :] * k_h[:, None, :]).sum(-1, keepdims=True) * scale  # (C, A, 1)
    p_h = jax.nn.softmax(s_h, axis=-1)                                        # length-1 key axis
    vis = jnp.einsum("cad,de->cae", p_h * v_h[:, None, :], who) + act[None]
    # MulitHeadAttention (1 head): q = vis[c, a], k = v = act[a]  (key length 1).
    q_m = jnp.einsum("cad,de->cae", vis, wmq)
    k_m = act @ wmk
    v_m = act @ wmv
    s_m = (q_m * k_m[None, :, :]).sum(-1, keepdims=True) * scale
    p_m = jax.nn.softmax(s_m, axis=-1)
    out_c = jnp.einsum("cad,de->cae", p_m * v_m[None, :, :], wmo)             # (C, A, D)
    return out_c.mean(axis=0)                                                 # (A, D)


if __name__ == "__main__":
    key = jax.random.PRNGKey(0)
    k_comb, k_act, k_par = jax.random.split(key, 3)

    # Small shapes consistent with the module (dim a multiple of 128 for a
    # lane-dense output; module defaults are num_actions=50, dim=1024).
    num_comb, num_act, dim = 4, 8, 128
    comb_fea = jax.random.normal(k_comb, (1, num_comb, dim), jnp.float32)
    action_fea = jax.random.normal(k_act, (1, num_act, dim), jnp.float32)
    params = init_params(k_par, dim)

    out = jax.block_until_ready(action_prompt(comb_fea, action_fea, params))
    assert out.shape == (num_act, dim)

    ref = action_prompt_reference(comb_fea, action_fea, params)
    max_err = float(jnp.max(jnp.abs(out - ref)))
    assert max_err < 5e-2, f"kernel mismatch vs reference: max|err|={max_err}"

    print("KERNEL_OK")
</pallas_src>

<mosaic_0001>
module attributes {stable_mosaic.version = 11 : i64} {
  func.func @_action_prompt_kernel(%arg0: memref<8x128xf32, #tpu.memory_space<vmem>>, %arg1: memref<128x128xbf16, #tpu.memory_space<vmem>>, %arg2: memref<128x128xbf16, #tpu.memory_space<vmem>>, %arg3: memref<8x128xf32, #tpu.memory_space<vmem>>) attributes {dimension_semantics = [], scalar_prefetch = 0 : i64, scratch_operands = 0 : i64, tpu.core_type = #tpu.core_type<tc>} {
    %c0 = arith.constant 0 : index
    %c0_0 = arith.constant 0 : index
    %0 = vector.load %arg0[%c0, %c0_0] : memref<8x128xf32, #tpu.memory_space<vmem>>, vector<8x128xf32>
    %1 = arith.truncf %0 : vector<8x128xf32> to vector<8x128xbf16>
    %c0_1 = arith.constant 0 : index
    %c0_2 = arith.constant 0 : index
    %2 = vector.load %arg1[%c0_1, %c0_2] : memref<128x128xbf16, #tpu.memory_space<vmem>>, vector<128x128xbf16>
    %cst = arith.constant dense<0.000000e+00> : vector<8x128xf32>
    %3 = tpu.matmul %1, %2, %cst {dimension_numbers = #tpu.dot_dimension_numbers<[1], [0], [0], [1], [0, 0, 1, 1], [], []>} : vector<8x128xbf16>, vector<128x128xbf16>, vector<8x128xf32> -> vector<8x128xf32>
    %4 = arith.truncf %3 : vector<8x128xf32> to vector<8x128xbf16>
    %c0_3 = arith.constant 0 : index
    %c0_4 = arith.constant 0 : index
    %5 = vector.load %arg2[%c0_3, %c0_4] : memref<128x128xbf16, #tpu.memory_space<vmem>>, vector<128x128xbf16>
    %cst_5 = arith.constant dense<0.000000e+00> : vector<8x128xf32>
    %6 = tpu.matmul %4, %5, %cst_5 {dimension_numbers = #tpu.dot_dimension_numbers<[1], [0], [0], [1], [0, 0, 1, 1], [], []>} : vector<8x128xbf16>, vector<128x128xbf16>, vector<8x128xf32> -> vector<8x128xf32>
    %c0_6 = arith.constant 0 : index
    %c0_7 = arith.constant 0 : index
    %7 = vector.load %arg3[%c0_6, %c0_7] : memref<8x128xf32, #tpu.memory_space<vmem>>, vector<8x128xf32>
    tpu.vector_store %arg3[%c0_6, %c0_7], %6 {strides = array<i32>} : memref<8x128xf32, #tpu.memory_space<vmem>>, vector<8x128xf32>,
    return
  }
}

</mosaic_0001>

<bundles_post_ra>
// kernel: action_prompt.1
= control target key start
LH: loop header
LB: loop body
LE: loop exit
PB: predicated region body
PF: predicated region fallthrough
CT: control target
= control target key end

     0   :  { %8 = vsyncpa [#allocation3], 0  ;;  %s462_s0 = inlined_call_operand.hbm [shape: f32[8,128], index: 0, kind: input, shape index: {}]   ;;  %s463_s1 = inlined_call_operand.hbm [shape: bf16[128,128], index: 1, kind: input, shape index: {}]   ;;  %s464_s2 = inlined_call_operand.hbm [shape: bf16[128,128], index: 2, kind: input, shape index: {}]   ;;  %s465_s3 = inlined_call_operand.hbm [shape: f32[8,128], index: 3, kind: output, shape index: {}]  }
   0x1   :  { %9 = vsyncpa [#allocation6], 0  ;;  %s26_s14 = sshll.u32 %s463_s1, 4  ;;  %s27_s14 = int_to_ptr.hbm [resolvable:$true] %s26_s14 }
   0x2   :  { %10 = vsyncpa [#allocation4], 0  ;;  %s424_s15 = smov [#allocation5]   ;;  %s16_s19 = sshll.u32 %s462_s0, 4  ;;  %s17_s19 = int_to_ptr.hbm [resolvable:$true] %s16_s19 }
   0x3   :  { %s28_s16 = sshll.u32 %s424_s15, 4  ;;  %s425_s20 = smov 64   ;;  %s29_s16 = int_to_ptr.vmem [resolvable:$true] %s28_s16 }
   0x4   :  { %s426_s21 = smov 4   ;;  %s427_s22 = smov [#allocation2]  }
   0x5   :  { %34 = dma.hbm_to_vmem [thread:$0]  %s27_s14, 1024, %s29_s16, [#allocation6], %s425_s20, %s425_s20, %s426_s21  }
   0x6   :  { %s18_s23 = sshll.u32 %s427_s22, 4  ;;  %s39_s26 = sshll.u32 %s464_s2, 4  ;;  %s19_s23 = int_to_ptr.vmem [resolvable:$true] %s18_s23  ;;  %s40_s26 = int_to_ptr.hbm [resolvable:$true] %s39_s26 }
   0x7   :  { %21 = dma.hbm_to_vmem [thread:$0]  %s17_s19, 128, %s19_s23, [#allocation3]  }
   0x8   :  { %s428_s1 = smov [#allocation7]  }
   0x9   :  { %s41_s27 = sshll.u32 %s428_s1, 4  ;;  %s42_s27 = int_to_ptr.vmem [resolvable:$true] %s41_s27 }
   0xa   :  { %47 = dma.hbm_to_vmem [thread:$0]  %s40_s26, 1024, %s42_s27, [#allocation6], %s425_s20, %s425_s20, %s426_s21  }
   0xb   :  { %418 = dma.done.wait [#allocation3], 128  }
   0xc   :  { %419 = vsyncadd [#allocation3], 4294967168 }
   0xd   :  { %420 = dma.done.wait [#allocation6], 2048  }
   0xe   :  { %421 = vsyncadd [#allocation6], 4294965248  ;;  %v307_v0 = vld [vmem:[#allocation5 + $0x38] sm:$0xff]  ;;  %v306_v1 = vld [vmem:[#allocation5 + $0x30] sm:$0xff]  ;;  %s429_s0 = smov [#allocation8]   ;;  %s225_s30 = sshll.u32 %s465_s3, 4  ;;  %s226_s30 = int_to_ptr.hbm [resolvable:$true] %s225_s30 }
   0xf   :  { %126 = vmatpush.bf16.msra.mxu0 %v307_v0  ;;  %v315_v2 = vld [vmem:[#allocation7 + $0x38] sm:$0xff]  ;;  %v314_v3 = vld [vmem:[#allocation7 + $0x30] sm:$0xff]  ;;  %v305_v4 = vld [vmem:[#allocation5 + $0x28] sm:$0xff]  ;;  %s223_s2 = sshll.u32 %s429_s0, 4  ;;  %s224_s2 = int_to_ptr.vmem [resolvable:$true] %s223_s2 }
  0x10   :  { %204 = vmatpush.bf16.msra.mxu1 %v315_v2  ;;  %v313_v5 = vld [vmem:[#allocation7 + $0x28] sm:$0xff]  ;;  %v304_v6 = vld [vmem:[#allocation5 + $0x20] sm:$0xff]  ;;  %v303_v8 = vld [vmem:[#allocation5 + $0x18] sm:$0xff] }
  0x11   :  { %v312_v7 = vld [vmem:[#allocation7 + $0x20] sm:$0xff]  ;;  %v311_v9 = vld [vmem:[#allocation7 + $0x18] sm:$0xff]  ;;  %v302_v10 = vld [vmem:[#allocation5 + $0x10] sm:$0xff] }
  0x12   :  { %v310_v11 = vld [vmem:[#allocation7 + $0x10] sm:$0xff]  ;;  %v301_v12 = vld [vmem:[#allocation5 + $0x8] sm:$0xff]  ;;  %v300_v14 = vld [vmem:[#allocation5] sm:$0xff] }
  0x13   :  { %127 = vmatpush.bf16.msra.mxu0 %v306_v1  ;;  %v309_v13 = vld [vmem:[#allocation7 + $0x8] sm:$0xff]  ;;  %v60_v15 = vld [vmem:[#allocation2] sm:$0xff]  ;;  %v308_v17 = vld [vmem:[#allocation7] sm:$0xff] }
  0x14   :  { %205 = vmatpush.bf16.msra.mxu1 %v314_v3  ;;  %v61_v16 = vpack.c.bf16 %v60_v15, %v60_v15 }
  0x17   :  { %128 = vmatpush.bf16.msra.mxu0 %v305_v4 }
  0x18   :  { %206 = vmatpush.bf16.msra.mxu1 %v313_v5 }
  0x1b   :  { %129 = vmatpush.bf16.msra.mxu0 %v304_v6 }
  0x1c   :  { %207 = vmatpush.bf16.msra.mxu1 %v312_v7 }
  0x1f   :  { %130 = vmatpush.bf16.msra.mxu0 %v303_v8 }
  0x20   :  { %208 = vmatpush.bf16.msra.mxu1 %v311_v9 }
  0x23   :  { %131 = vmatpush.bf16.msra.mxu0 %v302_v10 }
  0x24   :  { %209 = vmatpush.bf16.msra.mxu1 %v310_v11 }
  0x27   :  { %132 = vmatpush.bf16.msra.mxu0 %v301_v12 }
  0x28   :  { %210 = vmatpush.bf16.msra.mxu1 %v309_v13 }
  0x2b   :  { %133 = vmatpush.bf16.msra.mxu0 %v300_v14 }
  0x2c   :  { %211 = vmatpush.bf16.msra.mxu1 %v308_v17 }
  0x2e   :  { %134 = vmatmul.bf16.vlgmr.msra.gmra.mxu0 %v61_v16 }
  0xab   :  { %v135_v18 = vpop.f32.mrf.mxu0 }
  0xac   :  { %v139_v19 = vpack.c.bf16 %v135_v18, %v135_v18 }
  0xae   :  { %212 = vmatmul.bf16.vlgmr.msra.gmra.mxu1 %v139_v19 }
  0xb3   :  { %v137_v20 = vpop.f32.mrf.mxu0 }
 0x12b   :  { %v213_v21 = vpop.f32.mrf.mxu1 }
 0x12c   :  { %217 = vst [vmem:[#allocation8] sm:$0xff] %v213_v21 }
 0x12d   :  { %228 = dma.vmem_to_hbm [thread:$0]  %s224_s2, 128, %s226_s30, [#allocation4]  }
 0x133   :  { %v215_v22 = vpop.f32.mrf.mxu1 }
 0x134   :  { %422 = dma.done.wait [#allocation4], 128  }
 0x135   :  { %423 = vsyncadd [#allocation4], 4294967168 }
 0x136   :  { %233 = vsyncpa [#allocation3], 1 }
 0x137   :  { %234 = vsyncpa [#allocation6], 1 }
 0x138   :  { %235 = vsyncpa [#allocation4], 1 }

</bundles_post_ra>
